<compile_context>
chip_gen: v7x
topology: tpu7x:2x2x1
jax: 0.10.0
libtpu: 0.0.40
codegen_flags: <defaults>
</compile_context>

<pallas_src>
import math
import functools

import jax
import jax.numpy as jnp
from jax import lax
from jax.experimental import pallas as pl
from jax.experimental.pallas import tpu as pltpu


NEG_BIG = -1e9  # matches masked_fill(..., -1000000000.0) in the reference module


def _round_up(x, m):
    return (x + m - 1) // m * m


def _padded_bytes(rows, cols, itemsize):
    """VMEM footprint of a 2-D buffer after (8, 128) tile padding."""
    return _round_up(max(rows, 1), 8) * _round_up(max(cols, 1), 128) * itemsize


def _pick_tile(n, target):
    """Largest legal block size: `target` if it divides n, else the full extent."""
    return target if (n % target == 0) else n


# ---------------------------------------------------------------------------
# Stage 1: fused Q/K/V input projections (row-tiled GEMMs)
# ---------------------------------------------------------------------------
def _qkv_proj_kernel(xq_ref, xk_ref, xv_ref,
                     wq_ref, bq_ref, wk_ref, bk_ref, wv_ref, bv_ref,
                     q_ref, k_ref, v_ref):
    # x*: (tm, D)   w*: (D, D)   b*: (1, D)   outputs: (tm, D)
    # Operands keep their input dtype; accumulate in f32 on the MXU.
    q_ref[...] = (jnp.dot(xq_ref[...], wq_ref[...],
                          preferred_element_type=jnp.float32)
                  + bq_ref[...]).astype(q_ref.dtype)
    k_ref[...] = (jnp.dot(xk_ref[...], wk_ref[...],
                          preferred_element_type=jnp.float32)
                  + bk_ref[...]).astype(k_ref.dtype)
    v_ref[...] = (jnp.dot(xv_ref[...], wv_ref[...],
                          preferred_element_type=jnp.float32)
                  + bv_ref[...]).astype(v_ref.dtype)


def _qkv_projection(xq, xk, xv, wq, bq, wk, bk, wv, bv, *, row_tile=256):
    rows, D = xq.shape
    tm = _pick_tile(rows, row_tile)
    itemsize = xq.dtype.itemsize

    x_spec = pl.BlockSpec((tm, D), lambda i: (i, 0))
    w_spec = pl.BlockSpec((D, D), lambda i: (0, 0))
    b_spec = pl.BlockSpec((1, D), lambda i: (0, 0))

    est = (2 * 6 * _padded_bytes(tm, D, itemsize)      # 3 inputs + 3 outputs, dbl-buffered
           + 2 * 3 * _padded_bytes(D, D, itemsize)     # weights
           + 2 * 3 * _padded_bytes(1, D, itemsize))    # biases
    vmem_limit = min(max(2 * est + (4 << 20), 32 << 20), 100 << 20)

    out_shape = tuple(jax.ShapeDtypeStruct((rows, D), xq.dtype) for _ in range(3))
    return pl.pallas_call(
        _qkv_proj_kernel,
        out_shape=out_shape,
        grid_spec=pltpu.PrefetchScalarGridSpec(
            num_scalar_prefetch=0,
            grid=(rows // tm,),
            in_specs=[x_spec, x_spec, x_spec,
                      w_spec, b_spec, w_spec, b_spec, w_spec, b_spec],
            out_specs=[x_spec, x_spec, x_spec],
        ),
        compiler_params=pltpu.CompilerParams(
            dimension_semantics=("parallel",),
            vmem_limit_bytes=vmem_limit,
        ),
    )(xq, xk, xv, wq, bq, wk, bk, wv, bv)


# ---------------------------------------------------------------------------
# Stage 2: flash-style multi-head attention + output projection
# ---------------------------------------------------------------------------
def _flash_mha_kernel(key_len_ref,                     # SMEM (B,) int32 (scalar prefetch)
                      q_ref, k_ref, v_ref,             # (tq, D), (tk, D), (tk, D)
                      wo_ref, bo_ref,                  # (D, D), (1, D)
                      out_ref,                         # (tq, D)
                      m_ref, l_ref, acc_ref,           # scratch: (h,tq,1),(h,tq,1),(tq,D)
                      *, h, d_k, tk, scale, masked):
    b = pl.program_id(0)
    ki = pl.program_id(2)
    last_kv = pl.num_programs(2) - 1

    @pl.when(ki == 0)
    def _init():
        m_ref[...] = jnp.full(m_ref.shape, -jnp.inf, dtype=m_ref.dtype)
        l_ref[...] = jnp.zeros(l_ref.shape, dtype=l_ref.dtype)
        acc_ref[...] = jnp.zeros(acc_ref.shape, dtype=acc_ref.dtype)

    # Key-padding bias for this kv tile, built from the prefetched key length and
    # hoisted out of the head loop (no dense (B,S,S) mask DMA, no per-head VPU pass).
    if masked:
        kpos = ki * tk + lax.broadcasted_iota(jnp.int32, (1, tk), 1)
        bias = jnp.where(kpos < key_len_ref[b], 0.0, NEG_BIG).astype(jnp.float32)

    # 1/sqrt(d_k) folded into q once per step (cheaper than scaling every score tile).
    q = q_ref[...] * scale
    k = k_ref[...]
    v = v_ref[...]

    # Static loop over heads; per-head temporaries are bounded by the (tq, tk) tile.
    # TODO(synk): for large h, switch to a fori_loop / head grid axis to bound
    #             vreg live ranges explicitly.
    for hi in range(h):
        lo = hi * d_k
        qh = q[:, lo:lo + d_k]
        kh = k[:, lo:lo + d_k]
        vh = v[:, lo:lo + d_k]

        s = lax.dot_general(qh, kh, (((1,), (1,)), ((), ())),
                            preferred_element_type=jnp.float32)        # (tq, tk)
        if masked:
            s = s + bias

        m_prev = m_ref[hi]                                              # (tq, 1)
        m_new = jnp.maximum(m_prev, jnp.max(s, axis=-1, keepdims=True))
        alpha = jnp.exp(m_prev - m_new)
        e = jnp.exp(s - m_new)                                          # unnormalized probs
        l_ref[hi] = alpha * l_ref[hi] + jnp.sum(e, axis=-1, keepdims=True)
        m_ref[hi] = m_new

        pv = jnp.dot(e.astype(v.dtype), vh,
                     preferred_element_type=jnp.float32)                # (tq, d_k)
        acc_ref[:, lo:lo + d_k] = alpha * acc_ref[:, lo:lo + d_k] + pv

    @pl.when(ki == last_kv)
    def _finalize():
        # Post-P@V normalization: scale the (tq, d_k) context, not the (tq, tk) probs.
        for hi in range(h):
            lo = hi * d_k
            inv_l = pl.reciprocal(l_ref[hi], approx=True)
            acc_ref[:, lo:lo + d_k] = acc_ref[:, lo:lo + d_k] * inv_l
        # Single output projection with full contraction depth K = D.
        ctx = acc_ref[...].astype(q_ref.dtype)
        out = jnp.dot(ctx, wo_ref[...], preferred_element_type=jnp.float32) + bo_ref[...]
        out_ref[...] = out.astype(out_ref.dtype)


def _flash_attention(q, k, v, wo, bo, key_lens, *, h, masked,
                     q_tile=128, kv_tile=128):
    B, S, D = q.shape
    d_k = D // h
    tq = _pick_tile(S, q_tile)
    tk = _pick_tile(S, kv_tile)
    itemsize = q.dtype.itemsize

    kernel = functools.partial(_flash_mha_kernel, h=h, d_k=d_k, tk=tk,
                               scale=1.0 / math.sqrt(d_k), masked=masked)

    # index_maps receive the scalar-prefetch ref as a trailing positional arg.
    q_spec = pl.BlockSpec((None, tq, D), lambda b, qi, ki, kl: (b, qi, 0))
    kv_spec = pl.BlockSpec((None, tk, D), lambda b, qi, ki, kl: (b, ki, 0))
    wo_spec = pl.BlockSpec((D, D), lambda b, qi, ki, kl: (0, 0))
    bo_spec = pl.BlockSpec((1, D), lambda b, qi, ki, kl: (0, 0))
    out_spec = pl.BlockSpec((None, tq, D), lambda b, qi, ki, kl: (b, qi, 0))

    est = (2 * 2 * _padded_bytes(tq, D, itemsize)       # q block + out block (dbl-buffered)
           + 2 * 2 * _padded_bytes(tk, D, itemsize)     # k, v blocks
           + 2 * _padded_bytes(D, D, itemsize)          # wo
           + 2 * _padded_bytes(1, D, itemsize)          # bo
           + _padded_bytes(tq, D, 4)                    # acc scratch
           + 2 * h * _padded_bytes(tq, 1, 4))           # m, l scratch
    vmem_limit = min(max(2 * est + (4 << 20), 32 << 20), 100 << 20)

    return pl.pallas_call(
        kernel,
        out_shape=jax.ShapeDtypeStruct((B, S, D), q.dtype),
        grid_spec=pltpu.PrefetchScalarGridSpec(
            num_scalar_prefetch=1,
            grid=(B, S // tq, S // tk),
            in_specs=[q_spec, kv_spec, kv_spec, wo_spec, bo_spec],
            out_specs=out_spec,
            scratch_shapes=[
                pltpu.VMEM((h, tq, 1), jnp.float32),    # running max per head
                pltpu.VMEM((h, tq, 1), jnp.float32),    # running sum per head
                pltpu.VMEM((tq, D), jnp.float32),       # context accumulator
            ],
        ),
        compiler_params=pltpu.CompilerParams(
            dimension_semantics=("parallel", "parallel", "arbitrary"),
            vmem_limit_bytes=vmem_limit,
        ),
    )(key_lens, q, k, v, wo, bo)


def multi_headed_attention_forward(query, key, value, params, key_lengths=None, *, h):
    """Eval-mode forward of MultiHeadedAttention.

    query/key/value : (B, S, d_model)
    key_lengths     : optional (B,) int array; key positions >= key_lengths[b]
                      are masked (scores -> -1e9) like a padding mask.
                      None -> no masking (mask-free kernel variant).
    params          : dict wq,bq,wk,bk,wv,bv,wo,bo ; weights (in, out), biases (1, d_model).
    """
    B, S, D = query.shape
    assert D % h == 0, "d_model must be divisible by number of heads"

    masked = key_lengths is not None
    if masked:
        key_lengths = jnp.asarray(key_lengths, jnp.int32).reshape(B)
    else:
        key_lengths = jnp.full((B,), S, dtype=jnp.int32)

    rows = B * S
    q, k, v = _qkv_projection(
        query.reshape(rows, D), key.reshape(rows, D), value.reshape(rows, D),
        params["wq"], params["bq"], params["wk"], params["bk"],
        params["wv"], params["bv"])

    return _flash_attention(
        q.reshape(B, S, D), k.reshape(B, S, D), v.reshape(B, S, D),
        params["wo"], params["bo"], key_lengths, h=h, masked=masked)


if __name__ == "__main__":
    # Full-precision matmuls everywhere so the numerical check is meaningful.
    jax.config.update("jax_default_matmul_precision", "highest")

    B, S, D, H = 2, 8, 32, 4
    d_k = D // H
    rng = jax.random.PRNGKey(0)
    ks = jax.random.split(rng, 11)

    bound = 1.0 / math.sqrt(D)   # nn.Linear default init range

    def linear_init(kw, kb):
        w = jax.random.uniform(kw, (D, D), jnp.float32, -bound, bound)
        b = jax.random.uniform(kb, (1, D), jnp.float32, -bound, bound)
        return w, b

    wq, bq = linear_init(ks[0], ks[1])
    wk, bk = linear_init(ks[2], ks[3])
    wv, bv = linear_init(ks[4], ks[5])
    wo, bo = linear_init(ks[6], ks[7])
    params = dict(wq=wq, bq=bq, wk=wk, bk=bk, wv=wv, bv=bv, wo=wo, bo=bo)

    q_in = jax.random.normal(ks[8], (B, S, D), jnp.float32)
    k_in = jax.random.normal(ks[9], (B, S, D), jnp.float32)
    v_in = jax.random.normal(ks[10], (B, S, D), jnp.float32)

    # Padding mask: batch 1 masks its last 3 key positions.
    key_lens = jnp.array([S, S - 3], dtype=jnp.int32)

    # Pure-JAX reference (eval mode: dropout identity), mirrors the PyTorch module.
    def ref_mha(xq, xk, xv, mask):
        q = xq @ wq + bq
        k = xk @ wk + bk
        v = xv @ wv + bv
        qh = q.reshape(B, S, H, d_k).transpose(0, 2, 1, 3)
        kh = k.reshape(B, S, H, d_k).transpose(0, 2, 1, 3)
        vh = v.reshape(B, S, H, d_k).transpose(0, 2, 1, 3)
        s = jnp.einsum("bhqd,bhkd->bhqk", qh, kh) / math.sqrt(d_k)
        if mask is not None:
            s = jnp.where(mask[:, None, :, :] == 0, NEG_BIG, s)
        p = jax.nn.softmax(s, axis=-1)
        ctx = jnp.einsum("bhqk,bhkd->bhqd", p, vh)
        ctx = ctx.transpose(0, 2, 1, 3).reshape(B, S, D)
        return ctx @ wo + bo

    # Masked (key-padding) variant.
    out = multi_headed_attention_forward(q_in, k_in, v_in, params,
                                         key_lengths=key_lens, h=H)
    out = jax.block_until_ready(out)
    dense_mask = jnp.broadcast_to(
        (jnp.arange(S)[None, :] < key_lens[:, None]).astype(jnp.float32)[:, None, :],
        (B, S, S))
    ref = ref_mha(q_in, k_in, v_in, dense_mask)
    assert out.shape == (B, S, D)
    diff = jnp.max(jnp.abs(out - ref))
    assert jnp.allclose(out, ref, atol=2e-2, rtol=2e-2), (
        f"masked mismatch vs reference: max abs diff = {diff}")

    # Unmasked variant (compiles the mask-free kernel).
    out_nm = multi_headed_attention_forward(q_in, k_in, v_in, params, h=H)
    out_nm = jax.block_until_ready(out_nm)
    ref_nm = ref_mha(q_in, k_in, v_in, None)
    diff_nm = jnp.max(jnp.abs(out_nm - ref_nm))
    assert jnp.allclose(out_nm, ref_nm, atol=2e-2, rtol=2e-2), (
        f"unmasked mismatch vs reference: max abs diff = {diff_nm}")

    print("KERNEL_OK")
</pallas_src>

<mosaic_0001>
module attributes {stable_mosaic.version = 11 : i64} {
  func.func @_qkv_proj_kernel(%arg0: i32, %arg1: memref<16x32xf32, #tpu.memory_space<vmem>>, %arg2: memref<16x32xf32, #tpu.memory_space<vmem>>, %arg3: memref<16x32xf32, #tpu.memory_space<vmem>>, %arg4: memref<32x32xf32, #tpu.memory_space<vmem>>, %arg5: memref<1x32xf32, #tpu.memory_space<vmem>>, %arg6: memref<32x32xf32, #tpu.memory_space<vmem>>, %arg7: memref<1x32xf32, #tpu.memory_space<vmem>>, %arg8: memref<32x32xf32, #tpu.memory_space<vmem>>, %arg9: memref<1x32xf32, #tpu.memory_space<vmem>>, %arg10: memref<16x32xf32, #tpu.memory_space<vmem>>, %arg11: memref<16x32xf32, #tpu.memory_space<vmem>>, %arg12: memref<16x32xf32, #tpu.memory_space<vmem>>) attributes {dimension_semantics = [#tpu.dimension_semantics<parallel>], iteration_bounds = array<i64: 1>, scalar_prefetch = 0 : i64, scratch_operands = 0 : i64, tpu.core_type = #tpu.core_type<tc>, window_params = [{transform_indices = @transform_0, window_bounds = array<i64: 16, 32>}, {transform_indices = @transform_1, window_bounds = array<i64: 16, 32>}, {transform_indices = @transform_2, window_bounds = array<i64: 16, 32>}, {pipeline_mode = #tpu.pipeline_mode<synchronous>, transform_indices = @transform_3, window_bounds = array<i64: 32, 32>}, {pipeline_mode = #tpu.pipeline_mode<synchronous>, transform_indices = @transform_4, window_bounds = array<i64: 1, 32>}, {pipeline_mode = #tpu.pipeline_mode<synchronous>, transform_indices = @transform_5, window_bounds = array<i64: 32, 32>}, {pipeline_mode = #tpu.pipeline_mode<synchronous>, transform_indices = @transform_6, window_bounds = array<i64: 1, 32>}, {pipeline_mode = #tpu.pipeline_mode<synchronous>, transform_indices = @transform_7, window_bounds = array<i64: 32, 32>}, {pipeline_mode = #tpu.pipeline_mode<synchronous>, transform_indices = @transform_8, window_bounds = array<i64: 1, 32>}, {transform_indices = @transform_9, window_bounds = array<i64: 16, 32>}, {transform_indices = @transform_10, window_bounds = array<i64: 16, 32>}, {transform_indices = @transform_11, window_bounds = array<i64: 16, 32>}]} {
    %c0 = arith.constant 0 : index
    %c0_0 = arith.constant 0 : index
    %0 = vector.load %arg1[%c0, %c0_0] : memref<16x32xf32, #tpu.memory_space<vmem>>, vector<16x32xf32>
    %c0_1 = arith.constant 0 : index
    %c0_2 = arith.constant 0 : index
    %1 = vector.load %arg4[%c0_1, %c0_2] : memref<32x32xf32, #tpu.memory_space<vmem>>, vector<32x32xf32>
    %cst = arith.constant dense<0.000000e+00> : vector<16x32xf32>
    %2 = tpu.matmul %0, %1, %cst {dimension_numbers = #tpu.dot_dimension_numbers<[1], [0], [0], [1], [0, 0, 1, 1], [], []>, precision = #tpu.contract_precision<fp32>} : vector<16x32xf32>, vector<32x32xf32>, vector<16x32xf32> -> vector<16x32xf32>
    %c0_3 = arith.constant 0 : index
    %c0_4 = arith.constant 0 : index
    %3 = vector.load %arg5[%c0_3, %c0_4] : memref<1x32xf32, #tpu.memory_space<vmem>>, vector<1x32xf32>
    %4 = vector.broadcast %3 : vector<1x32xf32> to vector<16x32xf32>
    %5 = arith.addf %2, %4 : vector<16x32xf32>
    %c0_5 = arith.constant 0 : index
    %c0_6 = arith.constant 0 : index
    %6 = vector.load %arg10[%c0_5, %c0_6] : memref<16x32xf32, #tpu.memory_space<vmem>>, vector<16x32xf32>
    tpu.vector_store %arg10[%c0_5, %c0_6], %5 {strides = array<i32>} : memref<16x32xf32, #tpu.memory_space<vmem>>, vector<16x32xf32>,
    %c0_7 = arith.constant 0 : index
    %c0_8 = arith.constant 0 : index
    %7 = vector.load %arg2[%c0_7, %c0_8] : memref<16x32xf32, #tpu.memory_space<vmem>>, vector<16x32xf32>
    %c0_9 = arith.constant 0 : index
    %c0_10 = arith.constant 0 : index
    %8 = vector.load %arg6[%c0_9, %c0_10] : memref<32x32xf32, #tpu.memory_space<vmem>>, vector<32x32xf32>
    %cst_11 = arith.constant dense<0.000000e+00> : vector<16x32xf32>
    %9 = tpu.matmul %7, %8, %cst_11 {dimension_numbers = #tpu.dot_dimension_numbers<[1], [0], [0], [1], [0, 0, 1, 1], [], []>, precision = #tpu.contract_precision<fp32>} : vector<16x32xf32>, vector<32x32xf32>, vector<16x32xf32> -> vector<16x32xf32>
    %c0_12 = arith.constant 0 : index
    %c0_13 = arith.constant 0 : index
    %10 = vector.load %arg7[%c0_12, %c0_13] : memref<1x32xf32, #tpu.memory_space<vmem>>, vector<1x32xf32>
    %11 = vector.broadcast %10 : vector<1x32xf32> to vector<16x32xf32>
    %12 = arith.addf %9, %11 : vector<16x32xf32>
    %c0_14 = arith.constant 0 : index
    %c0_15 = arith.constant 0 : index
    %13 = vector.load %arg11[%c0_14, %c0_15] : memref<16x32xf32, #tpu.memory_space<vmem>>, vector<16x32xf32>
    tpu.vector_store %arg11[%c0_14, %c0_15], %12 {strides = array<i32>} : memref<16x32xf32, #tpu.memory_space<vmem>>, vector<16x32xf32>,
    %c0_16 = arith.constant 0 : index
    %c0_17 = arith.constant 0 : index
    %14 = vector.load %arg3[%c0_16, %c0_17] : memref<16x32xf32, #tpu.memory_space<vmem>>, vector<16x32xf32>
    %c0_18 = arith.constant 0 : index
    %c0_19 = arith.constant 0 : index
    %15 = vector.load %arg8[%c0_18, %c0_19] : memref<32x32xf32, #tpu.memory_space<vmem>>, vector<32x32xf32>
    %cst_20 = arith.constant dense<0.000000e+00> : vector<16x32xf32>
    %16 = tpu.matmul %14, %15, %cst_20 {dimension_numbers = #tpu.dot_dimension_numbers<[1], [0], [0], [1], [0, 0, 1, 1], [], []>, precision = #tpu.contract_precision<fp32>} : vector<16x32xf32>, vector<32x32xf32>, vector<16x32xf32> -> vector<16x32xf32>
    %c0_21 = arith.constant 0 : index
    %c0_22 = arith.constant 0 : index
    %17 = vector.load %arg9[%c0_21, %c0_22] : memref<1x32xf32, #tpu.memory_space<vmem>>, vector<1x32xf32>
    %18 = vector.broadcast %17 : vector<1x32xf32> to vector<16x32xf32>
    %19 = arith.addf %16, %18 : vector<16x32xf32>
    %c0_23 = arith.constant 0 : index
    %c0_24 = arith.constant 0 : index
    %20 = vector.load %arg12[%c0_23, %c0_24] : memref<16x32xf32, #tpu.memory_space<vmem>>, vector<16x32xf32>
    tpu.vector_store %arg12[%c0_23, %c0_24], %19 {strides = array<i32>} : memref<16x32xf32, #tpu.memory_space<vmem>>, vector<16x32xf32>,
    return
  }
  func.func @transform_0(%arg0: i32) -> (i32, i32) {
    %c0_i32 = arith.constant 0 : i32
    %c0_i32_0 = arith.constant 0 : i32
    return %arg0, %c0_i32 : i32, i32
  }
  func.func @transform_1(%arg0: i32) -> (i32, i32) {
    %c0_i32 = arith.constant 0 : i32
    %c0_i32_0 = arith.constant 0 : i32
    return %arg0, %c0_i32 : i32, i32
  }
  func.func @transform_2(%arg0: i32) -> (i32, i32) {
    %c0_i32 = arith.constant 0 : i32
    %c0_i32_0 = arith.constant 0 : i32
    return %arg0, %c0_i32 : i32, i32
  }
  func.func @transform_3(%arg0: i32) -> (i32, i32) {
    %c0_i32 = arith.constant 0 : i32
    %c0_i32_0 = arith.constant 0 : i32
    %c0_i32_1 = arith.constant 0 : i32
    return %c0_i32, %c0_i32_0 : i32, i32
  }
  func.func @transform_4(%arg0: i32) -> (i32, i32) {
    %c0_i32 = arith.constant 0 : i32
    %c0_i32_0 = arith.constant 0 : i32
    %c0_i32_1 = arith.constant 0 : i32
    return %c0_i32, %c0_i32_0 : i32, i32
  }
  func.func @transform_5(%arg0: i32) -> (i32, i32) {
    %c0_i32 = arith.constant 0 : i32
    %c0_i32_0 = arith.constant 0 : i32
    %c0_i32_1 = arith.constant 0 : i32
    return %c0_i32, %c0_i32_0 : i32, i32
  }
  func.func @transform_6(%arg0: i32) -> (i32, i32) {
    %c0_i32 = arith.constant 0 : i32
    %c0_i32_0 = arith.constant 0 : i32
    %c0_i32_1 = arith.constant 0 : i32
    return %c0_i32, %c0_i32_0 : i32, i32
  }
  func.func @transform_7(%arg0: i32) -> (i32, i32) {
    %c0_i32 = arith.constant 0 : i32
    %c0_i32_0 = arith.constant 0 : i32
    %c0_i32_1 = arith.constant 0 : i32
    return %c0_i32, %c0_i32_0 : i32, i32
  }
  func.func @transform_8(%arg0: i32) -> (i32, i32) {
    %c0_i32 = arith.constant 0 : i32
    %c0_i32_0 = arith.constant 0 : i32
    %c0_i32_1 = arith.constant 0 : i32
    return %c0_i32, %c0_i32_0 : i32, i32
  }
  func.func @transform_9(%arg0: i32) -> (i32, i32) {
    %c0_i32 = arith.constant 0 : i32
    %c0_i32_0 = arith.constant 0 : i32
    return %arg0, %c0_i32 : i32, i32
  }
  func.func @transform_10(%arg0: i32) -> (i32, i32) {
    %c0_i32 = arith.constant 0 : i32
    %c0_i32_0 = arith.constant 0 : i32
    return %arg0, %c0_i32 : i32, i32
  }
  func.func @transform_11(%arg0: i32) -> (i32, i32) {
    %c0_i32 = arith.constant 0 : i32
    %c0_i32_0 = arith.constant 0 : i32
    return %arg0, %c0_i32 : i32, i32
  }
}

</mosaic_0001>

<bundles_post_ra>
// kernel: tpu_custom_call.1
= control target key start
LH: loop header
LB: loop body
LE: loop exit
PB: predicated region body
PF: predicated region fallthrough
CT: control target
= control target key end

     0   :  { %17 = vsyncpa [#allocation3], 0  ;;  %s3023_s0 = inlined_call_operand.hbm [shape: f32[16,32], index: 0, kind: input, shape index: {}]   ;;  %s3024_s1 = inlined_call_operand.hbm [shape: f32[16,32], index: 1, kind: input, shape index: {}]   ;;  %s3025_s2 = inlined_call_operand.hbm [shape: f32[16,32], index: 2, kind: input, shape index: {}]   ;;  %s3026_s3 = inlined_call_operand.hbm [shape: f32[32,32], index: 3, kind: input, shape index: {}]   ;;  %s3027_s4 = inlined_call_operand.vmem [shape: f32[1,32], index: 4, kind: input, shape index: {}]   ;;  %s3028_s5 = inlined_call_operand.hbm [shape: f32[32,32], index: 5, kind: input, shape index: {}]   ;;  %s3029_s6 = inlined_call_operand.vmem [shape: f32[1,32], index: 6, kind: input, shape index: {}]   ;;  %s3030_s7 = inlined_call_operand.hbm [shape: f32[32,32], index: 7, kind: input, shape index: {}]   ;;  %s3031_s8 = inlined_call_operand.vmem [shape: f32[1,32], index: 8, kind: input, shape index: {}]   ;;  %s3032_s9 = inlined_call_operand.hbm [shape: f32[16,32], index: 9, kind: output, shape index: {0}]   ;;  %s3033_s10 = inlined_call_operand.hbm [shape: f32[16,32], index: 10, kind: output, shape index: {1}]   ;;  %s3034_s11 = inlined_call_operand.hbm [shape: f32[16,32], index: 11, kind: output, shape index: {2}]  }
   0x1   :  { %18 = vsyncpa [#allocation6], 0 }
   0x2   :  { %19 = vsyncpa [#allocation9], 0 }
   0x3   :  { %20 = vsyncpa [#allocation12], 0 }
   0x4   :  { %21 = vsyncpa [#allocation4], 0 }
   0x5   :  { %22 = vsyncpa [#allocation15], 0  ;;  %s2528_s17 = smov [#allocation5]   ;;  %s2529_s19 = smov [#allocation8]  }
   0x6   :  { %s40_s18 = sshll.u32 %s2528_s17, 4  ;;  %s64_s20 = sshll.u32 %s2529_s19, 4  ;;  %s41_s18 = int_to_ptr.vmem [resolvable:$true] %s40_s18  ;;  %s2599_s20 = int_to_ptr.vmem [resolvable:$true] %s64_s20 }
   0x7   :  { %s2318_s23 = scalar_lea.hbm %s3024_s1, 256 }
   0x8   :  { %p2319_p0 = scmp.ne.s32.totalorder %s3024_s1, %s2318_s23  ;;  %p2322_p1 = scmp.lt.u32.totalorder %s2318_s23, %s3024_s1 }
   0xa   :  { %p2324_p2 = pnand %p2322_p1, %p2319_p0 }
   0xc   :  { %2327 = shalt.err (!%p2324_p2)
}
   0xd   :  { %s2328_s28 = scalar_lea.vmem %s41_s18, 256  ;;  %p2333_p4 = scmp.lt.s32.totalorder %s41_s18, %s41_s18 }
   0xe   :  { %p2329_p3 = scmp.ne.s32.totalorder %s41_s18, %s2328_s28  ;;  %p2334_p5 = scmp.lt.s32.totalorder %s2328_s28, %s2328_s28 }
  0x10   :  { %p2335_p6 = por %p2334_p5, %p2333_p4 }
  0x12   :  { %p2336_p7 = pnand %p2335_p6, %p2329_p3 }
  0x14   :  { %2339 = shalt.err (!%p2336_p7)
}
  0x15   :  { %s2530_s29 = smov 128   ;;  %s2531_s30 = smov 8  }
  0x16   :  { %46 = dma.hbm_to_vmem [thread:$0]  %s3024_s1, 256, %s41_s18, [#allocation6], %s2530_s29, %s2530_s29, %s2531_s30  }
  0x17   :  { %s2340_s16 = scalar_lea.hbm %s3026_s3, 512 }
  0x18   :  { %p2341_p8 = scmp.ne.s32.totalorder %s3026_s3, %s2340_s16  ;;  %p2344_p9 = scmp.lt.u32.totalorder %s2340_s16, %s3026_s3 }
  0x1a   :  { %p2346_p10 = pnand %p2344_p9, %p2341_p8 }
  0x1c   :  { %2349 = shalt.err (!%p2346_p10)
}
  0x1d   :  { %s2350_s23 = scalar_lea.vmem %s2599_s20, 512  ;;  %p2355_p12 = scmp.lt.s32.totalorder %s2599_s20, %s2599_s20 }
  0x1e   :  { %p2351_p11 = scmp.ne.s32.totalorder %s2599_s20, %s2350_s23  ;;  %p2356_p13 = scmp.lt.s32.totalorder %s2350_s23, %s2350_s23 }
  0x20   :  { %p2357_p0 = por %p2356_p13, %p2355_p12 }
  0x22   :  { %p2358_p1 = pnand %p2357_p0, %p2351_p11 }
  0x24   :  { %2361 = shalt.err (!%p2358_p1)
}
  0x25   :  { %70 = dma.hbm_to_vmem [thread:$0]  %s3026_s3, 512, %s2599_s20, [#allocation9], %s2530_s29, %s2530_s29, %s2531_s30  }
  0x26   :  { %s2532_s24 = smov [#allocation2]   ;;  %s2533_s26 = smov [#allocation7]  }
  0x27   :  { %s28_s25 = sshll.u32 %s2532_s24, 4  ;;  %s52_s27 = sshll.u32 %s2533_s26, 4  ;;  %s29_s25 = int_to_ptr.vmem [resolvable:$true] %s28_s25  ;;  %s2636_s27 = int_to_ptr.vmem [resolvable:$true] %s52_s27 }
  0x28   :  { %s2362_s13 = scalar_lea.hbm %s3023_s0, 256 }
  0x29   :  { %p2363_p2 = scmp.ne.s32.totalorder %s3023_s0, %s2362_s13  ;;  %p2366_p3 = scmp.lt.u32.totalorder %s2362_s13, %s3023_s0 }
  0x2b   :  { %p2368_p4 = pnand %p2366_p3, %p2363_p2 }
  0x2d   :  { %2371 = shalt.err (!%p2368_p4)
}
  0x2e   :  { %s2372_s3 = scalar_lea.vmem %s29_s25, 256  ;;  %p2377_p6 = scmp.lt.s32.totalorder %s29_s25, %s29_s25 }
  0x2f   :  { %p2373_p5 = scmp.ne.s32.totalorder %s29_s25, %s2372_s3  ;;  %p2378_p7 = scmp.lt.s32.totalorder %s2372_s3, %s2372_s3 }
  0x31   :  { %p2379_p8 = por %p2378_p7, %p2377_p6 }
  0x33   :  { %p2380_p9 = pnand %p2379_p8, %p2373_p5 }
  0x35   :  { %2383 = shalt.err (!%p2380_p9)
}
  0x36   :  { %34 = dma.hbm_to_vmem [thread:$0]  %s3023_s0, 256, %s29_s25, [#allocation3], %s2530_s29, %s2530_s29, %s2531_s30  }
  0x37   :  { %s2384_s23 = scalar_lea.hbm %s3025_s2, 256 }
  0x38   :  { %p2385_p10 = scmp.ne.s32.totalorder %s3025_s2, %s2384_s23  ;;  %p2388_p11 = scmp.lt.u32.totalorder %s2384_s23, %s3025_s2 }
  0x3a   :  { %p2390_p12 = pnand %p2388_p11, %p2385_p10 }
  0x3c   :  { %2393 = shalt.err (!%p2390_p12)
}
  0x3d   :  { %s2394_s28 = scalar_lea.vmem %s2636_s27, 256  ;;  %p2399_p0 = scmp.lt.s32.totalorder %s2636_s27, %s2636_s27 }
  0x3e   :  { %p2395_p13 = scmp.ne.s32.totalorder %s2636_s27, %s2394_s28  ;;  %p2400_p1 = scmp.lt.s32.totalorder %s2394_s28, %s2394_s28 }
  0x40   :  { %p2401_p2 = por %p2400_p1, %p2399_p0 }
  0x42   :  { %p2402_p3 = pnand %p2401_p2, %p2395_p13 }
  0x44   :  { %2405 = shalt.err (!%p2402_p3)
}
  0x45   :  { %58 = dma.hbm_to_vmem [thread:$0]  %s3025_s2, 256, %s2636_s27, [#allocation6], %s2530_s29, %s2530_s29, %s2531_s30  }
  0x46   :  { %s2534_s12 = smov [#allocation10]   ;;  %s2535_s14 = smov [#allocation11]  }
  0x47   :  { %s78_s13 = sshll.u32 %s2534_s12, 4  ;;  %s92_s15 = sshll.u32 %s2535_s14, 4  ;;  %s79_s13 = int_to_ptr.vmem [resolvable:$true] %s78_s13  ;;  %s2673_s15 = int_to_ptr.vmem [resolvable:$true] %s92_s15 }
  0x48   :  { %s2406_s3 = scalar_lea.hbm %s3028_s5, 512 }
  0x49   :  { %p2407_p4 = scmp.ne.s32.totalorder %s3028_s5, %s2406_s3  ;;  %p2410_p5 = scmp.lt.u32.totalorder %s2406_s3, %s3028_s5 }
  0x4b   :  { %p2412_p6 = pnand %p2410_p5, %p2407_p4 }
  0x4d   :  { %2415 = shalt.err (!%p2412_p6)
}
  0x4e   :  { %s2416_s2 = scalar_lea.vmem %s79_s13, 512  ;;  %p2421_p8 = scmp.lt.s32.totalorder %s79_s13, %s79_s13 }
  0x4f   :  { %p2417_p7 = scmp.ne.s32.totalorder %s79_s13, %s2416_s2  ;;  %p2422_p9 = scmp.lt.s32.totalorder %s2416_s2, %s2416_s2 }
  0x51   :  { %p2423_p10 = por %p2422_p9, %p2421_p8 }
  0x53   :  { %p2424_p11 = pnand %p2423_p10, %p2417_p7 }
  0x55   :  { %2427 = shalt.err (!%p2424_p11)
}
  0x56   :  { %84 = dma.hbm_to_vmem [thread:$0]  %s3028_s5, 512, %s79_s13, [#allocation9], %s2530_s29, %s2530_s29, %s2531_s30  }
  0x57   :  { %s2428_s24 = scalar_lea.hbm %s3030_s7, 512 }
  0x58   :  { %p2429_p12 = scmp.ne.s32.totalorder %s3030_s7, %s2428_s24  ;;  %p2432_p13 = scmp.lt.u32.totalorder %s2428_s24, %s3030_s7 }
  0x5a   :  { %p2434_p0 = pnand %p2432_p13, %p2429_p12 }
  0x5c   :  { %2437 = shalt.err (!%p2434_p0)
}
  0x5d   :  { %s2438_s12 = scalar_lea.vmem %s2673_s15, 512  ;;  %p2443_p2 = scmp.lt.s32.totalorder %s2673_s15, %s2673_s15 }
  0x5e   :  { %p2439_p1 = scmp.ne.s32.totalorder %s2673_s15, %s2438_s12  ;;  %p2444_p3 = scmp.lt.s32.totalorder %s2438_s12, %s2438_s12 }
  0x60   :  { %p2445_p4 = por %p2444_p3, %p2443_p2 }
  0x62   :  { %p2446_p5 = pnand %p2445_p4, %p2439_p1 }
  0x64   :  { %2449 = shalt.err (!%p2446_p5)
}
  0x65   :  { %98 = dma.hbm_to_vmem [thread:$0]  %s3030_s7, 512, %s2673_s15, [#allocation12], %s2530_s29, %s2530_s29, %s2531_s30  }
  0x66   :  { %2516 = dma.done.wait [#allocation3], 256  }
  0x67   :  { %2517 = vsyncadd [#allocation3], 4294967040 }
  0x68   :  { %2518 = dma.done.wait [#allocation6], 512  }
  0x69   :  { %2519 = vsyncadd [#allocation6], 4294966784 }
  0x6a   :  { %2520 = dma.done.wait [#allocation9], 1024  }
  0x6b   :  { %2521 = vsyncadd [#allocation9], 4294966272 }
  0x6c   :  { %2522 = dma.done.wait [#allocation12], 512  }
  0x6d   :  { %2523 = vsyncadd [#allocation12], 4294966784  ;;  %vm132_vm0 = vcmask 261120   ;;  %v121_v0 = vld [vmem:[#allocation8] sm:$0xff]  ;;  %v122_v1 = vld [vmem:[#allocation8 + $0x8] sm:$0xff]  ;;  %s2536_s15 = smov [#allocation13]  }
  0x6e   :  { %v123_v2 = vld [vmem:[#allocation8 + $0x10] sm:$0xff]  ;;  %v140_v3 = vand.u32 4294901760, %v121_v0  ;;  %v143_v4 = vand.u32 4294901760, %v122_v1  ;;  %v124_v5 = vld [vmem:[#allocation8 + $0x18] sm:$0xff]  ;;  %v2740_v29 = vld [vmem:[#allocation10] sm:$0xff]  ;;  %s1772_s16 = sshll.u32 %s2536_s15, 4  ;;  %s1773_s16 = int_to_ptr.vmem [resolvable:$true] %s1772_s16 }
  0x6f   :  { %v146_v6 = vand.u32 4294901760, %v123_v2  ;;  %v119_v7 = vld [vmem:[#allocation2] sm:$0xff]  ;;  %v120_v8 = vld [vmem:[#allocation2 + $0x8] sm:$0xff]  ;;  %v149_v9 = vand.u32 4294901760, %v124_v5  ;;  %v2746_v37 = vld [vmem:[#allocation10 + $0x8] sm:$0xff]  ;;  %v689_v41 = vand.u32 4294901760, %v2740_v29  ;;  %p2455_p7 = scmp.lt.s32.totalorder %s1773_s16, %s1773_s16 }
  0x70   :  { %v134_v10 = vsel %vm132_vm0, %v119_v7, 0  ;;  %v137_v11 = vsel %vm132_vm0, %v120_v8, 0  ;;  %v2712_v12 = vpack.c.bf16 %v143_v4, %v140_v3  ;;  %v230_v15 = vsub.f32 %v121_v0, %v140_v3  ;;  %v2751_v42 = vld [vmem:[#allocation11] sm:$0xff]  ;;  %v2753_v43 = vld [vmem:[#allocation11 + $0x8] sm:$0xff]  ;;  %v1218_v47 = vld [vmem:[#allocation7] sm:$0xff]  ;;  %s2450_s17 = scalar_lea.vmem %s1773_s16, 256 }
  0x71   :  { %v2714_v13 = vand.u32 4294901760, %v134_v10  ;;  %v2716_v14 = vand.u32 4294901760, %v137_v11  ;;  %v2718_v16 = vpack.c.bf16 %v149_v9, %v146_v6  ;;  %v237_v17 = vsub.f32 %v122_v1, %v143_v4  ;;  %v669_v46 = vld [vmem:[#allocation5] sm:$0xff]  ;;  %v670_v48 = vld [vmem:[#allocation5 + $0x8] sm:$0xff]  ;;  %v1219_v55 = vld [vmem:[#allocation7 + $0x8] sm:$0xff]  ;;  %p2451_p6 = scmp.ne.s32.totalorder %s1773_s16, %s2450_s17  ;;  %p2456_p8 = scmp.lt.s32.totalorder %s2450_s17, %s2450_s17 }
  0x72   :  { %v2720_v18 = vsub.f32 %v123_v2, %v146_v6  ;;  %v2722_v19 = vsub.f32 %v124_v5, %v149_v9  ;;  %2128 = vmatprep.subr.bf16.mxu1 %v2712_v12  ;;  %2152 = vmatprep.subr.bf16.mxu0 %v2712_v12  ;;  %v231_v22 = vand.u32 4294901760, %v230_v15  ;;  %v692_v52 = vand.u32 4294901760, %v2746_v37  ;;  %v2766_v61 = vld [vmem:[#allocation10 + $0x10] sm:$0xff]  ;;  %v2772_v0 = vld [vmem:[#allocation10 + $0x18] sm:$0xff] }
  0x73   :  { %v2727_v20 = vsub.f32 %v134_v10, %v2714_v13  ;;  %v2730_v21 = vsub.f32 %v137_v11, %v2716_v14  ;;  %2130 = vmatpush3.bf16.msra.mxu1 %v2712_v12  ;;  %2154 = vmatpush3.bf16.msra.mxu0 %v2712_v12  ;;  %v238_v23 = vand.u32 4294901760, %v237_v17  ;;  %v1238_v53 = vand.u32 4294901760, %v2751_v42  ;;  %v1222_v5 = vld [vmem:[#allocation11 + $0x10] sm:$0xff]  ;;  %v1223_v11 = vld [vmem:[#allocation11 + $0x18] sm:$0xff]  ;;  %p2457_p9 = por %p2456_p8, %p2455_p7 }
  0x74   :  { %v245_v24 = vand.u32 4294901760, %v2720_v18  ;;  %v252_v25 = vand.u32 4294901760, %v2722_v19  ;;  %2132 = vmatprep.subr.bf16.mxu1 %v2718_v16  ;;  %2156 = vmatprep.subr.bf16.mxu0 %v2718_v16  ;;  %v232_v28 = vsub.f32 %v230_v15, %v231_v22  ;;  %v1241_v54 = vand.u32 4294901760, %v2753_v43 }
  0x75   :  { %v210_v26 = vand.u32 4294901760, %v2727_v20  ;;  %v220_v27 = vand.u32 4294901760, %v2730_v21  ;;  %v239_v30 = vsub.f32 %v237_v17, %v238_v23  ;;  %v2159_v31 = vpack.c.bf16 %v238_v23, %v231_v22  ;;  %p2458_p10 = pnand %p2457_p9, %p2451_p6 }
  0x76   :  { %v246_v32 = vsub.f32 %v2720_v18, %v245_v24  ;;  %v253_v33 = vsub.f32 %v2722_v19, %v252_v25  ;;  %v233_v36 = vand.u32 4294901760, %v232_v28  ;;  %v2163_v51 = vpack.c.bf16 %v252_v25, %v245_v24 }
  0x77   :  { %v211_v34 = vsub.f32 %v2727_v20, %v210_v26  ;;  %1970 = vmatprep.mubr.f32.mxu0 %v210_v26  ;;  %v221_v35 = vsub.f32 %v2730_v21, %v220_v27  ;;  %2134 = vmatpush3.bf16.msra.mxu1 %v2718_v16  ;;  %v240_v38 = vand.u32 4294901760, %v239_v30  ;;  %v683_v56 = vsel %vm132_vm0, %v669_v46, 0 }
  0x78   :  { %2158 = vmatpush3.bf16.msra.mxu0 %v2718_v16  ;;  %v247_v39 = vand.u32 4294901760, %v246_v32  ;;  %v254_v40 = vand.u32 4294901760, %v253_v33  ;;  %v1232_v57 = vsel %vm132_vm0, %v1218_v47, 0  ;;  %v686_v58 = vsel %vm132_vm0, %v670_v48, 0 }
  0x79   :  { %v212_v44 = vand.u32 4294901760, %v211_v34  ;;  %v222_v45 = vand.u32 4294901760, %v221_v35  ;;  %2160 = vmatprep.subr.bf16.mxu0 %v2159_v31  ;;  %v2135_v49 = vpack.c.bf16 %v240_v38, %v233_v36  ;;  %v2764_v59 = vsub.f32 %v2740_v29, %v689_v41 }
  0x7a   :  { %v2139_v50 = vpack.c.bf16 %v254_v40, %v247_v39  ;;  %v2143_v60 = vpack.c.bf16 %v237_v17, %v230_v15  ;;  %v2768_v62 = vand.u32 4294901760, %v683_v56  ;;  %v2770_v63 = vand.u32 4294901760, %v1232_v57 }
  0x7b   :  { %1937 = vmatprep.mubr.f32.mxu1 %v212_v44  ;;  %1971 = vmatmul.mubr.f32.vlgmr.msra.gmra.mrb[0].mxu0 %v220_v27  ;;  %v2774_v1 = vand.u32 4294901760, %v686_v58  ;;  %v780_v2 = vand.u32 4294901760, %v2764_v59  ;;  %v2778_v3 = vsub.f32 %v2746_v37, %v692_v52  ;;  %v1235_v4 = vsel %vm132_vm0, %v1219_v55, 0 }
  0x7c   :  { %1938 = vmatmul.mubr.f32.vlgmr.msra.gmra.mrb[0].mxu1 %v222_v45  ;;  %2136 = vmatprep.subr.bf16.mxu1 %v2135_v49  ;;  %v2784_v6 = vsub.f32 %v683_v56, %v2768_v62  ;;  %v2787_v7 = vsub.f32 %v1232_v57, %v2770_v63  ;;  %v2789_v8 = vand.u32 4294901760, %v1235_v4  ;;  %v2792_v9 = vsub.f32 %v2751_v42, %v1238_v53 }
  0x7d   :  { %2138 = vmatpush3.bf16.msra.mxu1 %v2135_v49  ;;  %2162 = vmatpush3.bf16.msra.mxu0 %v2159_v31  ;;  %v695_v10 = vand.u32 4294901760, %v2766_v61  ;;  %v787_v15 = vand.u32 4294901760, %v2778_v3  ;;  %v2797_v17 = vsub.f32 %v2753_v43, %v1241_v54  ;;  %v2147_v22 = vpack.c.bf16 %v2722_v19, %v2720_v18 }
  0x7e   :  { %2140 = vmatprep.subr.bf16.mxu1 %v2139_v50  ;;  %2164 = vmatprep.subr.bf16.mxu0 %v2163_v51  ;;  %v698_v23 = vand.u32 4294901760, %v2772_v0  ;;  %v1329_v24 = vand.u32 4294901760, %v2792_v9  ;;  %v1244_v25 = vand.u32 4294901760, %v1222_v5  ;;  %v759_v26 = vand.u32 4294901760, %v2784_v6 }
  0x7f   :  { %1948 = vmatprep.mubr.f32.mxu1 %v2714_v13  ;;  %1981 = vmatprep.mubr.f32.mxu0 %v2714_v13  ;;  %v1308_v27 = vand.u32 4294901760, %v2787_v7  ;;  %v1336_v28 = vand.u32 4294901760, %v2797_v17  ;;  %v1247_v30 = vand.u32 4294901760, %v1223_v11  ;;  %v2808_v31 = vsub.f32 %v686_v58, %v2774_v1 }
  0x80   :  { %v781_v18 = vsub.f32 %v2764_v59, %v780_v2  ;;  %v2814_v19 = vsub.f32 %v1235_v4, %v2789_v8  ;;  %v788_v32 = vsub.f32 %v2778_v3, %v787_v15  ;;  %v1330_v33 = vsub.f32 %v2792_v9, %v1329_v24 }
  0x81   :  { %2142 = vmatpush3.bf16.msra.mxu1 %v2139_v50  ;;  %2166 = vmatpush3.bf16.msra.mxu0 %v2163_v51  ;;  %v2825_v34 = vsub.f32 %v2766_v61, %v695_v10  ;;  %v2830_v35 = vpack.c.bf16 %v692_v52, %v689_v41  ;;  %v1337_v36 = vsub.f32 %v2797_v17, %v1336_v28  ;;  %v769_v39 = vand.u32 4294901760, %v2808_v31 }
  0x82   :  { %2144 = vmatprep.subr.bf16.mxu1 %v2143_v60  ;;  %2168 = vmatprep.subr.bf16.mxu0 %v2712_v12  ;;  %v2836_v37 = vpack.c.bf16 %v1241_v54, %v1238_v53  ;;  %v760_v38 = vsub.f32 %v2784_v6, %v759_v26  ;;  %v2849_v40 = vsub.f32 %v2772_v0, %v698_v23  ;;  %v782_v43 = vand.u32 4294901760, %v781_v18 }
  0x83   :  { %v794_v29 = vand.u32 4294901760, %v2825_v34  ;;  %v2851_v41 = vsub.f32 %v1222_v5, %v1244_v25  ;;  %v2853_v42 = vsub.f32 %v1223_v11, %v1247_v30  ;;  %v789_v44 = vand.u32 4294901760, %v788_v32 }
  0x84   :  { %1949 = vmatmul.mubr.f32.vlgmr.msra.gmra.mrb[0].mxu1 %v2716_v14  ;;  %1982 = vmatmul.mubr.f32.vlgmr.msra.gmra.mrb[0].mxu0 %v2716_v14  ;;  %v1318_v45 = vand.u32 4294901760, %v2814_v19  ;;  %v1331_v46 = vand.u32 4294901760, %v1330_v33  ;;  %v2862_v49 = vpack.c.bf16 %v698_v23, %v695_v10  ;;  %v2864_v50 = vpack.c.bf16 %v1247_v30, %v1244_v25 }
  0x85   :  { %2146 = vmatpush3.bf16.msra.mxu1 %v2143_v60  ;;  %2170 = vmatpush3.bf16.msra.mxu0 %v2712_v12  ;;  %v1309_v12 = vsub.f32 %v2787_v7, %v1308_v27  ;;  %v1343_v47 = vand.u32 4294901760, %v2851_v41  ;;  %v1350_v48 = vand.u32 4294901760, %v2853_v42  ;;  %v761_v51 = vand.u32 4294901760, %v760_v38 }
  0x86   :  { %2148 = vmatprep.subr.bf16.mxu1 %v2147_v22  ;;  %2172 = vmatprep.subr.bf16.mxu0 %v2718_v16  ;;  %v770_v56 = vsub.f32 %v2808_v31, %v769_v39  ;;  %v1319_v57 = vsub.f32 %v2814_v19, %v1318_v45  ;;  %v2183_v58 = vpack.c.bf16 %v789_v44, %v782_v43 }
  0x87   :  { %1959 = vmatprep.mubr.f32.mxu1 %v2727_v20  ;;  %1992 = vmatprep.mubr.f32.mxu0 %v2714_v13  ;;  %v1338_v20 = vand.u32 4294901760, %v1337_v36  ;;  %v801_v13 = vand.u32 4294901760, %v2849_v40  ;;  %v1310_v52 = vand.u32 4294901760, %v1309_v12  ;;  %v1344_v54 = vsub.f32 %v2851_v41, %v1343_v47 }
  0x88   :  { %v1351_v55 = vsub.f32 %v2853_v42, %v1350_v48  ;;  %v771_v4 = vand.u32 4294901760, %v770_v56  ;;  %v1320_v5 = vand.u32 4294901760, %v1319_v57  ;;  %v2239_v23 = vpack.c.bf16 %v2797_v17, %v2792_v9 }
  0x89   :  { %2150 = vmatpush3.bf16.msra.mxu1 %v2147_v22  ;;  %2174 = vmatpush3.bf16.msra.mxu0 %v2718_v16  ;;  %v795_v16 = vsub.f32 %v2825_v34, %v794_v29  ;;  %v802_v53 = vsub.f32 %v2849_v40, %v801_v13  ;;  %v2231_v60 = vpack.c.bf16 %v1338_v20, %v1331_v46  ;;  %v1345_v61 = vand.u32 4294901760, %v1344_v54 }
  0x8a   :  { %2176 = vmatprep.subr.bf16.mxu1 %v2830_v35  ;;  %2224 = vmatprep.subr.bf16.mxu0 %v2836_v37  ;;  %v1352_v0 = vand.u32 4294901760, %v1351_v55  ;;  %v2191_v22 = vpack.c.bf16 %v2778_v3, %v2764_v59  ;;  %v2195_v25 = vpack.c.bf16 %v2849_v40, %v2825_v34  ;;  %v2243_v30 = vpack.c.bf16 %v2853_v42, %v2851_v41  ;;  %v1818_v3 = vld [vmem:[%s3027_s4] ss:$0 sm:$0xff] }
  0x8b   :  { %v2207_v18 = vpack.c.bf16 %v787_v15, %v780_v2  ;;  %v2255_v32 = vpack.c.bf16 %v1336_v28, %v1329_v24  ;;  %v2211_v59 = vpack.c.bf16 %v801_v13, %v794_v29  ;;  %v2259_v2 = vpack.c.bf16 %v1350_v48, %v1343_v47 }
  0x8c   :  { %1960 = vmatmul.mubr.f32.vlgmr.msra.gmra.mrb[0].mxu1 %v2730_v21  ;;  %1993 = vmatmul.mubr.f32.vlgmr.msra.gmra.mrb[0].mxu0 %v2716_v14  ;;  %v796_v21 = vand.u32 4294901760, %v795_v16  ;;  %v803_v14 = vand.u32 4294901760, %v802_v53  ;;  %v2235_v11 = vpack.c.bf16 %v1352_v0, %v1345_v61 }
  0x8d   :  { %2178 = vmatpush3.bf16.msra.mxu1 %v2830_v35  ;;  %2226 = vmatpush3.bf16.msra.mxu0 %v2836_v37 }
  0x8e   :  { %2180 = vmatprep.subr.bf16.mxu1 %v2862_v49  ;;  %2228 = vmatprep.subr.bf16.mxu0 %v2864_v50  ;;  %v2187_v10 = vpack.c.bf16 %v803_v14, %v796_v21 }
  0x8f   :  { %2003 = vmatprep.mubr.f32.mxu1 %v761_v51  ;;  %2069 = vmatprep.mubr.f32.mxu0 %v1310_v52 }
  0x91   :  { %2182 = vmatpush3.bf16.msra.mxu1 %v2862_v49  ;;  %2230 = vmatpush3.bf16.msra.mxu0 %v2864_v50 }
  0x92   :  { %2184 = vmatprep.subr.bf16.mxu1 %v2183_v58  ;;  %2232 = vmatprep.subr.bf16.mxu0 %v2231_v60 }
  0x94   :  { %2004 = vmatmul.mubr.f32.vlgmr.msra.gmra.mrb[2].mxu1 %v771_v4  ;;  %2070 = vmatmul.mubr.f32.vlgmr.msra.gmra.mrb[2].mxu0 %v1320_v5 }
  0x95   :  { %2186 = vmatpush3.bf16.msra.mxu1 %v2183_v58  ;;  %2234 = vmatpush3.bf16.msra.mxu0 %v2231_v60 }
  0x96   :  { %2188 = vmatprep.subr.bf16.mxu1 %v2187_v10  ;;  %2236 = vmatprep.subr.bf16.mxu0 %v2235_v11 }
  0x97   :  { %2014 = vmatprep.mubr.f32.mxu1 %v2768_v62  ;;  %2080 = vmatprep.mubr.f32.mxu0 %v2770_v63 }
  0x99   :  { %2190 = vmatpush3.bf16.msra.mxu1 %v2187_v10  ;;  %2238 = vmatpush3.bf16.msra.mxu0 %v2235_v11 }
  0x9a   :  { %2192 = vmatprep.subr.bf16.mxu1 %v2191_v22  ;;  %2240 = vmatprep.subr.bf16.mxu0 %v2239_v23 }
  0x9c   :  { %2015 = vmatmul.mubr.f32.vlgmr.msra.gmra.mrb[2].mxu1 %v2774_v1  ;;  %2081 = vmatmul.mubr.f32.vlgmr.msra.gmra.mrb[2].mxu0 %v2789_v8 }
  0x9d   :  { %2194 = vmatpush3.bf16.msra.mxu1 %v2191_v22  ;;  %2242 = vmatpush3.bf16.msra.mxu0 %v2239_v23 }
  0x9e   :  { %2196 = vmatprep.subr.bf16.mxu1 %v2195_v25  ;;  %2244 = vmatprep.subr.bf16.mxu0 %v2243_v30 }
  0x9f   :  { %2025 = vmatprep.mubr.f32.mxu1 %v2784_v6  ;;  %2091 = vmatprep.mubr.f32.mxu0 %v2787_v7 }
  0xa1   :  { %2198 = vmatpush3.bf16.msra.mxu1 %v2195_v25  ;;  %2246 = vmatpush3.bf16.msra.mxu0 %v2243_v30 }
  0xa2   :  { %2200 = vmatprep.subr.bf16.mxu1 %v2830_v35  ;;  %2248 = vmatprep.subr.bf16.mxu0 %v2836_v37 }
  0xa4   :  { %2026 = vmatmul.mubr.f32.vlgmr.msra.gmra.mrb[2].mxu1 %v2808_v31  ;;  %2092 = vmatmul.mubr.f32.vlgmr.msra.gmra.mrb[2].mxu0 %v2814_v19 }
  0xa5   :  { %2202 = vmatpush3.bf16.msra.mxu1 %v2830_v35  ;;  %2250 = vmatpush3.bf16.msra.mxu0 %v2836_v37 }
  0xa6   :  { %2204 = vmatprep.subr.bf16.mxu1 %v2862_v49  ;;  %2252 = vmatprep.subr.bf16.mxu0 %v2864_v50 }
  0xa7   :  { %2036 = vmatprep.mubr.f32.mxu1 %v759_v26  ;;  %2102 = vmatprep.mubr.f32.mxu0 %v1308_v27 }
  0xa9   :  { %2206 = vmatpush3.bf16.msra.mxu1 %v2862_v49  ;;  %2254 = vmatpush3.bf16.msra.mxu0 %v2864_v50 }
  0xaa   :  { %2208 = vmatprep.subr.bf16.mxu1 %v2207_v18  ;;  %2256 = vmatprep.subr.bf16.mxu0 %v2255_v32 }
  0xac   :  { %2037 = vmatmul.mubr.f32.vlgmr.msra.gmra.mrb[2].mxu1 %v769_v39  ;;  %2103 = vmatmul.mubr.f32.vlgmr.msra.gmra.mrb[2].mxu0 %v1318_v45 }
  0xad   :  { %2210 = vmatpush3.bf16.msra.mxu1 %v2207_v18  ;;  %2258 = vmatpush3.bf16.msra.mxu0 %v2255_v32 }
  0xae   :  { %2212 = vmatprep.subr.bf16.mxu1 %v2211_v59  ;;  %2260 = vmatprep.subr.bf16.mxu0 %v2259_v2 }
  0xaf   :  { %2047 = vmatprep.mubr.f32.mxu1 %v2768_v62  ;;  %2113 = vmatprep.mubr.f32.mxu0 %v2770_v63 }
  0xb1   :  { %2214 = vmatpush3.bf16.msra.mxu1 %v2211_v59  ;;  %2262 = vmatpush3.bf16.msra.mxu0 %v2259_v2 }
  0xb2   :  { %2216 = vmatprep.subr.bf16.mxu1 %v2830_v35  ;;  %2264 = vmatprep.subr.bf16.mxu0 %v2836_v37 }
  0xb4   :  { %2048 = vmatmul.mubr.f32.vlgmr.msra.gmra.mrb[2].mxu1 %v2774_v1  ;;  %2114 = vmatmul.mubr.f32.vlgmr.msra.gmra.mrb[2].mxu0 %v2789_v8 }
  0xb5   :  { %2218 = vmatpush3.bf16.msra.mxu1 %v2830_v35  ;;  %2266 = vmatpush3.bf16.msra.mxu0 %v2836_v37 }
  0xb6   :  { %2220 = vmatprep.subr.bf16.mxu1 %v2862_v49  ;;  %2268 = vmatprep.subr.bf16.mxu0 %v2864_v50 }
  0xb7   :  { %2058 = vmatprep.mubr.f32.mxu1 %v2768_v62  ;;  %2124 = vmatprep.mubr.f32.mxu0 %v2770_v63 }
  0xb9   :  { %2222 = vmatpush3.bf16.msra.mxu1 %v2862_v49  ;;  %2270 = vmatpush3.bf16.msra.mxu0 %v2864_v50 }
  0xbc   :  { %2059 = vmatmul.mubr.f32.vlgmr.msra.gmra.mrb[2].mxu1 %v2774_v1  ;;  %2125 = vmatmul.mubr.f32.vlgmr.msra.gmra.mrb[2].mxu0 %v2789_v8 }
 0x15f   :  { %v1961_v6 = vpop.f32.mrb[0].mxu1  ;;  %v1994_v7 = vpop.f32.mrb[0].mxu0 }
 0x160   :  { %v2271_v9 = vadd.f32 %v1961_v6, %v1818_v3  ;;  %v401_v15 = vpop.f32.mrb[1].mxu1  ;;  %v657_v17 = vpop.f32.mrb[1].mxu0 }
 0x161   :  { %v2273_v62 = vadd.f32 %v1818_v3, %v401_v15 }
 0x162   :  { %v2272_v63 = vadd.f32 %v2271_v9, %v1994_v7 }
 0x163   :  { %v2274_v24 = vadd.f32 %v2273_v62, %v657_v17 }
 0x164   :  { %668 = vst.msk [vmem:[#allocation13 + $0x8] sm:$0xff] %vm132_vm0, %v2272_v63 }
 0x165   :  { %667 = vst.msk [vmem:[#allocation13] sm:$0xff] %vm132_vm0, %v2274_v24 }
 0x166   :  { %2461 = shalt.err (!%p2458_p10)
}
 0x167   :  { %s2462_s20 = scalar_lea.hbm %s3032_s9, 256 }
 0x168   :  { %p2463_p11 = scmp.ne.s32.totalorder %s3032_s9, %s2462_s20  ;;  %p2466_p12 = scmp.lt.u32.totalorder %s2462_s20, %s3032_s9 }
 0x16a   :  { %p2468_p13 = pnand %p2466_p12, %p2463_p11 }
 0x16c   :  { %2471 = shalt.err (!%p2468_p13)
}
 0x16d   :  { %1778 = dma.vmem_to_hbm [thread:$0]  %s1773_s16, 256, %s3032_s9, [#allocation4], %s2530_s29, %s2530_s29, %s2531_s30  }
 0x16e   :  { %v1819_v1 = vld [vmem:[%s3029_s6] ss:$0 sm:$0xff]  ;;  %s2537_s28 = smov [#allocation14]   ;;  %s2538_s25 = smov [#allocation16]  }
 0x16f   :  { %v1820_v8 = vld [vmem:[%s3031_s8] ss:$0 sm:$0xff]  ;;  %s1784_s0 = sshll.u32 %s2537_s28, 4  ;;  %s1796_s12 = sshll.u32 %s2538_s25, 4  ;;  %s1785_s0 = int_to_ptr.vmem [resolvable:$true] %s1784_s0  ;;  %s2984_s12 = int_to_ptr.vmem [resolvable:$true] %s1796_s12 }
 0x170   :  { %s2472_s6 = scalar_lea.vmem %s1785_s0, 256  ;;  %p2477_p1 = scmp.lt.s32.totalorder %s1785_s0, %s1785_s0 }
 0x171   :  { %p2473_p0 = scmp.ne.s32.totalorder %s1785_s0, %s2472_s6  ;;  %p2478_p2 = scmp.lt.s32.totalorder %s2472_s6, %s2472_s6 }
 0x173   :  { %p2479_p3 = por %p2478_p2, %p2477_p1 }
 0x175   :  { %p2480_p4 = pnand %p2479_p3, %p2473_p0 }
 0x18f   :  { %v2060_v26 = vpop.f32.mrb[2].mxu1  ;;  %v2126_v27 = vpop.f32.mrb[2].mxu0 }
 0x190   :  { %v2275_v28 = vadd.f32 %v2060_v26, %v1819_v1  ;;  %v2277_v31 = vadd.f32 %v2126_v27, %v1820_v8  ;;  %v1206_v19 = vpop.f32.mrb[3].mxu1  ;;  %v1755_v33 = vpop.f32.mrb[3].mxu0 }
 0x191   :  { %v2276_v34 = vadd.f32 %v1819_v1, %v1206_v19  ;;  %v2278_v35 = vadd.f32 %v1820_v8, %v1755_v33 }
 0x192   :  { %1217 = vst.msk [vmem:[#allocation14 + $0x8] sm:$0xff] %vm132_vm0, %v2275_v28  ;;  %1766 = vst.msk [vmem:[#allocation16 + $0x8] sm:$0xff] %vm132_vm0, %v2277_v31 }
 0x193   :  { %1216 = vst.msk [vmem:[#allocation14] sm:$0xff] %vm132_vm0, %v2276_v34  ;;  %1765 = vst.msk [vmem:[#allocation16] sm:$0xff] %vm132_vm0, %v2278_v35 }
 0x194   :  { %2483 = shalt.err (!%p2480_p4)
}
 0x195   :  { %s2484_s5 = scalar_lea.hbm %s3033_s10, 256 }
 0x196   :  { %p2485_p5 = scmp.ne.s32.totalorder %s3033_s10, %s2484_s5  ;;  %p2488_p6 = scmp.lt.u32.totalorder %s2484_s5, %s3033_s10 }
 0x198   :  { %p2490_p7 = pnand %p2488_p6, %p2485_p5 }
 0x19a   :  { %2493 = shalt.err (!%p2490_p7)
}
 0x19b   :  { %1790 = dma.vmem_to_hbm [thread:$0]  %s1785_s0, 256, %s3033_s10, [#allocation15], %s2530_s29, %s2530_s29, %s2531_s30  }
 0x19c   :  { %s2494_s4 = scalar_lea.vmem %s2984_s12, 256  ;;  %p2499_p9 = scmp.lt.s32.totalorder %s2984_s12, %s2984_s12 }
 0x19d   :  { %p2495_p8 = scmp.ne.s32.totalorder %s2984_s12, %s2494_s4  ;;  %p2500_p10 = scmp.lt.s32.totalorder %s2494_s4, %s2494_s4 }
 0x19f   :  { %p2501_p11 = por %p2500_p10, %p2499_p9 }
 0x1a1   :  { %p2502_p12 = pnand %p2501_p11, %p2495_p8 }
 0x1a3   :  { %2505 = shalt.err (!%p2502_p12)
}
 0x1a4   :  { %s2506_s19 = scalar_lea.hbm %s3034_s11, 256 }
 0x1a5   :  { %p2507_p13 = scmp.ne.s32.totalorder %s3034_s11, %s2506_s19  ;;  %p2510_p0 = scmp.lt.u32.totalorder %s2506_s19, %s3034_s11 }
 0x1a7   :  { %p2512_p1 = pnand %p2510_p0, %p2507_p13 }
 0x1a9   :  { %2515 = shalt.err (!%p2512_p1)
}
 0x1aa   :  { %1802 = dma.vmem_to_hbm [thread:$0]  %s2984_s12, 256, %s3034_s11, [#allocation15], %s2530_s29, %s2530_s29, %s2531_s30  }
 0x1ab   :  { %2524 = dma.done.wait [#allocation4], 256  }
 0x1ac   :  { %2525 = vsyncadd [#allocation4], 4294967040 }
 0x1ad   :  { %2526 = dma.done.wait [#allocation15], 512  }
 0x1ae   :  { %2527 = vsyncadd [#allocation15], 4294966784 }
 0x1af   :  { %1812 = vsyncpa [#allocation3], 1 }
 0x1b0   :  { %1813 = vsyncpa [#allocation6], 1 }
 0x1b1   :  { %1814 = vsyncpa [#allocation9], 1 }
 0x1b2   :  { %1815 = vsyncpa [#allocation12], 1 }
 0x1b3   :  { %1816 = vsyncpa [#allocation4], 1 }
 0x1b4   :  { %1817 = vsyncpa [#allocation15], 1 }

</bundles_post_ra>
